<compile_context>
chip_gen: v7x
topology: tpu7x:2x2x1
jax: 0.10.0
libtpu: 0.0.40
codegen_flags: <defaults>
</compile_context>

<pallas_src>
import functools

import jax
import jax.numpy as jnp
from jax.experimental import pallas as pl
from jax.experimental.pallas import tpu as pltpu


def _round_up(x, m):
    return (x + m - 1) // m * m


def highway_kernel(x_ref, w_ref, b_ref, o_ref, *, e_pad):
    # x_ref: (tb, E_pad)            input tile (native dtype)
    # w_ref: (E_pad, 2*E_pad)       fused [Wp^T | Wg^T] (resident, maybe bf16)
    # b_ref: (1, 2*E_pad)           fused [bp | bg], f32
    # o_ref: (tb, E_pad)            output tile
    x = x_ref[...]

    # MXU operands in the weight dtype (bf16 on request), f32 accumulation.
    xm = x if x.dtype == w_ref.dtype else x.astype(w_ref.dtype)
    pg = jnp.dot(xm, w_ref[...], preferred_element_type=jnp.float32) + b_ref[...]

    # Static, 128-aligned lane slices of the fused result.
    proj = jnp.maximum(pg[:, :e_pad], 0.0)          # VPU
    gate = jax.nn.sigmoid(pg[:, e_pad:])            # EUP

    x_f32 = x.astype(jnp.float32)
    out = x_f32 + gate * (proj - x_f32)             # == gate*proj + (1-gate)*x
    o_ref[...] = out.astype(o_ref.dtype)


def highway(x, w_proj, b_proj, w_gate, b_gate, *, max_tb=1024, mxu_dtype=None):
    """x: (B, E). w_*: (E, E) PyTorch Linear weight (out, in). b_*: (E,).

    mxu_dtype: optional dtype for the MXU operands (e.g. jnp.bfloat16 on v5e).
    """
    B, E = x.shape
    dtype = x.dtype
    w_dtype = jnp.dtype(mxu_dtype) if mxu_dtype is not None else jnp.dtype(dtype)

    # ---- Lane-dense feature padding (multiple of 128), only when needed ----
    E_pad = _round_up(max(E, 1), 128)
    needs_pad = (E != E_pad)

    # Fused, pre-transposed, zero-padded weight (E_pad, 2*E_pad) = [Wp^T | Wg^T].
    w = jnp.zeros((E_pad, 2 * E_pad), dtype=w_dtype)
    w = w.at[:E, :E].set(w_proj.T.astype(w_dtype))
    w = w.at[:E, E_pad:E_pad + E].set(w_gate.T.astype(w_dtype))

    # Fused bias (1, 2*E_pad), kept in f32 (matches the f32 accumulator).
    b = jnp.zeros((1, 2 * E_pad), dtype=jnp.float32)
    b = b.at[0, :E].set(b_proj.astype(jnp.float32))
    b = b.at[0, E_pad:E_pad + E].set(b_gate.astype(jnp.float32))

    itemsize = jnp.dtype(dtype).itemsize
    w_itemsize = w_dtype.itemsize
    # Sublane packing of the streamed tiles: 8 rows f32, 16 bf16, 32 int8/fp8.
    pack = 8 * max(1, 4 // itemsize)

    # ---- Generation-aware VMEM budget, enforced via vmem_limit_bytes ----
    try:
        phys_vmem = int(pltpu.get_tpu_info().vmem_capacity_bytes)
    except Exception:
        phys_vmem = 64 * 1024 * 1024          # v7x has the smallest VMEM
    vmem_budget = min(phys_vmem // 2, 64 * 1024 * 1024)

    # Resident fused W + bias: the default pipeliner double-buffers even
    # constant-index blocks, so count them twice.
    resident = 2 * (E_pad * 2 * E_pad * w_itemsize) + 2 * (2 * E_pad * 4)
    # Per batch-row bytes: x + out tiles (double-buffered) plus f32 temporaries
    # (pg is 2*E_pad, proj/gate/x_f32/out ~ 4*E_pad -> ~24*E_pad bytes/row).
    per_row = 2 * 2 * E_pad * itemsize + 24 * E_pad
    tb_cap = max(pack, (vmem_budget - resident) // max(per_row, 1))

    tb = min(max_tb, tb_cap, _round_up(B, pack))
    if B > pack:
        # Keep >=2 grid steps so dimension_semantics=("parallel",) can shard
        # the batch across both v7x TensorCores (near-free on v5e/v6e).
        tb = min(tb, _round_up((B + 1) // 2, pack))
    tb = max(pack, (tb // pack) * pack)

    if needs_pad:
        # Padded path: single throwaway temp; alias it to the output so no
        # second (B_pad, E_pad) HBM buffer is allocated.
        B_pad = _round_up(B, pack)
        x_in = jnp.zeros((B_pad, E_pad), dtype=dtype).at[:B, :E].set(x)
        io_aliases = {0: 0}
    else:
        # Fast path: no pad copy, no trailing slice; ragged batch handled by
        # the partial last grid block.
        x_in = x
        io_aliases = {}

    rows = x_in.shape[0]
    grid = (pl.cdiv(rows, tb),)

    cost = pl.CostEstimate(
        flops=4 * rows * E_pad * E_pad + 6 * rows * E_pad,
        transcendentals=rows * E_pad,
        bytes_accessed=2 * rows * E_pad * itemsize
        + 2 * E_pad * E_pad * w_itemsize
        + 2 * E_pad * 4,
    )

    out = pl.pallas_call(
        functools.partial(highway_kernel, e_pad=E_pad),
        out_shape=jax.ShapeDtypeStruct((rows, E_pad), dtype),
        grid_spec=pltpu.PrefetchScalarGridSpec(
            num_scalar_prefetch=0,
            grid=grid,
            in_specs=[
                pl.BlockSpec((tb, E_pad), lambda i: (i, 0)),          # x tile
                pl.BlockSpec((E_pad, 2 * E_pad), lambda i: (0, 0)),   # fused W (resident)
                pl.BlockSpec((1, 2 * E_pad), lambda i: (0, 0)),       # fused bias
            ],
            out_specs=pl.BlockSpec((tb, E_pad), lambda i: (i, 0)),
        ),
        compiler_params=pltpu.CompilerParams(
            dimension_semantics=("parallel",),
            vmem_limit_bytes=int(vmem_budget),
        ),
        cost_estimate=cost,
        input_output_aliases=io_aliases,
    )(x_in, w, b)

    if needs_pad:
        out = out[:B, :E]
    return out


def highway_ref(x, w_proj, b_proj, w_gate, b_gate):
    proj = jax.nn.relu(x @ w_proj.T + b_proj)
    gate = jax.nn.sigmoid(x @ w_gate.T + b_gate)
    return gate * proj + (1.0 - gate) * x


if __name__ == "__main__":
    key = jax.random.PRNGKey(0)

    def make_inputs(k, e_word, batch):
        kx, kwp, kbp, kwg, kbg = jax.random.split(k, 5)
        # nn.Linear default init: U[-1/sqrt(E), 1/sqrt(E)].
        bound = 1.0 / (e_word ** 0.5)
        x = jax.random.normal(kx, (batch, e_word), dtype=jnp.float32)
        w_proj = jax.random.uniform(kwp, (e_word, e_word), jnp.float32, -bound, bound)
        b_proj = jax.random.uniform(kbp, (e_word,), jnp.float32, -bound, bound)
        w_gate = jax.random.uniform(kwg, (e_word, e_word), jnp.float32, -bound, bound)
        b_gate = jax.random.uniform(kbg, (e_word,), jnp.float32, -bound, bound)
        return x, w_proj, b_proj, w_gate, b_gate

    highway_jit = jax.jit(highway, static_argnames=("max_tb", "mxu_dtype"))

    # 1) Small unaligned case (padded path), matches the module spec shapes.
    k1, k2 = jax.random.split(key)
    args1 = make_inputs(k1, 32, 8)
    out1 = jax.block_until_ready(highway_jit(*args1))
    ref1 = highway_ref(*args1)
    assert out1.shape == (8, 32)
    assert jnp.allclose(out1, ref1, atol=1e-5, rtol=1e-5), "padded-path mismatch"

    # 2) Aligned fast path (no pad, no slice), two grid steps for megacore.
    args2 = make_inputs(k2, 128, 48)
    out2 = jax.block_until_ready(highway_jit(*args2))
    ref2 = highway_ref(*args2)
    assert out2.shape == (48, 128)
    assert jnp.allclose(out2, ref2, atol=1e-4, rtol=1e-4), "fast-path mismatch"

    # 3) bf16-MXU variant (v5e-friendly); looser tolerance expected.
    out3 = jax.block_until_ready(highway_jit(*args1, mxu_dtype=jnp.bfloat16))
    assert jnp.allclose(out3, ref1, atol=5e-2, rtol=5e-2), "bf16-MXU mismatch"

    print("KERNEL_OK")
</pallas_src>

<mosaic_0001>
module attributes {stable_mosaic.version = 11 : i64} {
  func.func @highway_kernel(%arg0: i32, %arg1: memref<8x128xf32, #tpu.memory_space<vmem>>, %arg2: memref<128x256xf32, #tpu.memory_space<vmem>>, %arg3: memref<1x256xf32, #tpu.memory_space<vmem>>, %arg4: memref<8x128xf32, #tpu.memory_space<vmem>>) attributes {dimension_semantics = [#tpu.dimension_semantics<parallel>], iteration_bounds = array<i64: 1>, scalar_prefetch = 0 : i64, scratch_operands = 0 : i64, tpu.core_type = #tpu.core_type<tc>, window_params = [{transform_indices = @transform_0, window_bounds = array<i64: 8, 128>}, {pipeline_mode = #tpu.pipeline_mode<synchronous>, transform_indices = @transform_1, window_bounds = array<i64: 128, 256>}, {pipeline_mode = #tpu.pipeline_mode<synchronous>, transform_indices = @transform_2, window_bounds = array<i64: 1, 256>}, {transform_indices = @transform_3, window_bounds = array<i64: 8, 128>}]} {
    %c0 = arith.constant 0 : index
    %c0_0 = arith.constant 0 : index
    %0 = vector.load %arg1[%c0, %c0_0] : memref<8x128xf32, #tpu.memory_space<vmem>>, vector<8x128xf32>
    %c0_1 = arith.constant 0 : index
    %c0_2 = arith.constant 0 : index
    %1 = vector.load %arg2[%c0_1, %c0_2] : memref<128x256xf32, #tpu.memory_space<vmem>>, vector<128x256xf32>
    %cst = arith.constant dense<0.000000e+00> : vector<8x256xf32>
    %2 = tpu.matmul %0, %1, %cst {dimension_numbers = #tpu.dot_dimension_numbers<[1], [0], [0], [1], [0, 0, 1, 1], [], []>} : vector<8x128xf32>, vector<128x256xf32>, vector<8x256xf32> -> vector<8x256xf32>
    %c0_3 = arith.constant 0 : index
    %c0_4 = arith.constant 0 : index
    %3 = vector.load %arg3[%c0_3, %c0_4] : memref<1x256xf32, #tpu.memory_space<vmem>>, vector<1x256xf32>
    %4 = vector.broadcast %3 : vector<1x256xf32> to vector<8x256xf32>
    %5 = arith.addf %2, %4 : vector<8x256xf32>
    %6 = vector.extract_strided_slice %5 {offsets = [0, 0], sizes = [8, 128], strides = [1, 1]} : vector<8x256xf32> to vector<8x128xf32>
    %cst_5 = arith.constant 0.000000e+00 : f32
    %7 = vector.broadcast %cst_5 : f32 to vector<8x128xf32>
    %8 = arith.maximumf %6, %7 : vector<8x128xf32>
    %9 = vector.extract_strided_slice %5 {offsets = [0, 128], sizes = [8, 128], strides = [1, 1]} : vector<8x256xf32> to vector<8x128xf32>
    %10 = arith.negf %9 : vector<8x128xf32>
    %11 = math.exp %10 : vector<8x128xf32>
    %cst_6 = arith.constant 1.000000e+00 : f32
    %12 = vector.broadcast %cst_6 : f32 to vector<8x128xf32>
    %13 = arith.addf %12, %11 : vector<8x128xf32>
    %14 = arith.divf %12, %13 : vector<8x128xf32>
    %15 = arith.subf %8, %0 : vector<8x128xf32>
    %16 = arith.mulf %14, %15 : vector<8x128xf32>
    %17 = arith.addf %0, %16 : vector<8x128xf32>
    %c0_7 = arith.constant 0 : index
    %c0_8 = arith.constant 0 : index
    %18 = vector.load %arg4[%c0_7, %c0_8] : memref<8x128xf32, #tpu.memory_space<vmem>>, vector<8x128xf32>
    tpu.vector_store %arg4[%c0_7, %c0_8], %17 {strides = array<i32>} : memref<8x128xf32, #tpu.memory_space<vmem>>, vector<8x128xf32>,
    return
  }
  func.func @transform_0(%arg0: i32) -> (i32, i32) {
    %c0_i32 = arith.constant 0 : i32
    %c0_i32_0 = arith.constant 0 : i32
    return %arg0, %c0_i32 : i32, i32
  }
  func.func @transform_1(%arg0: i32) -> (i32, i32) {
    %c0_i32 = arith.constant 0 : i32
    %c0_i32_0 = arith.constant 0 : i32
    %c0_i32_1 = arith.constant 0 : i32
    return %c0_i32, %c0_i32_0 : i32, i32
  }
  func.func @transform_2(%arg0: i32) -> (i32, i32) {
    %c0_i32 = arith.constant 0 : i32
    %c0_i32_0 = arith.constant 0 : i32
    %c0_i32_1 = arith.constant 0 : i32
    return %c0_i32, %c0_i32_0 : i32, i32
  }
  func.func @transform_3(%arg0: i32) -> (i32, i32) {
    %c0_i32 = arith.constant 0 : i32
    %c0_i32_0 = arith.constant 0 : i32
    return %arg0, %c0_i32 : i32, i32
  }
}

</mosaic_0001>

<bundles_post_ra>
// kernel: highway.1
= control target key start
LH: loop header
LB: loop body
LE: loop exit
PB: predicated region body
PF: predicated region fallthrough
CT: control target
= control target key end

     0   :  { %v183_v3 = vmov 0.0   ;;  %v49_v50 = vlaneseq  ;;  %s309_s1 = inlined_call_operand.vmem [shape: f32[128,256], index: 1, kind: input, shape index: {}]   ;;  %s310_s0 = inlined_call_operand.vmem [shape: f32[8,128], index: 0, kind: input, shape index: {}, may-alias: {0,3}]   ;;  %s311_s2 = inlined_call_operand.vmem [shape: f32[1,256], index: 2, kind: input, shape index: {}]   ;;  %s312_s3 = inlined_call_operand.vmem [shape: f32[8,128], index: 3, kind: output, shape index: {}, may-alias: {0,3}]  }
   0x1   :  { %v16_v0 = vld [vmem:[%s309_s1 + $0x8] sm:$0xff]  ;;  %v18_v1 = vld [vmem:[%s309_s1 + $0x18] sm:$0xff]  ;;  %v15_v2 = vld [vmem:[%s309_s1] sm:$0xff]  ;;  %123 = vmatprep.mubr.f32.mxu0 %v183_v3 }
   0x2   :  { %v146_v4 = vpack.c.bf16 %v18_v1, %v16_v0  ;;  %v17_v5 = vld [vmem:[%s309_s1 + $0x10] sm:$0xff]  ;;  %v20_v6 = vld [vmem:[%s309_s1 + $0x28] sm:$0xff]  ;;  %v22_v7 = vld [vmem:[%s309_s1 + $0x38] sm:$0xff]  ;;  %v50_v51 = vshrl.u32 %v49_v50, 7 }
   0x3   :  { %v148_v8 = vpack.c.bf16 %v17_v5, %v15_v2  ;;  %v150_v9 = vpack.c.bf16 %v22_v7, %v20_v6  ;;  %v19_v10 = vld [vmem:[%s309_s1 + $0x20] sm:$0xff]  ;;  %v21_v11 = vld [vmem:[%s309_s1 + $0x30] sm:$0xff]  ;;  %v24_v12 = vld [vmem:[%s309_s1 + $0x48] sm:$0xff] }
   0x4   :  { %147 = vmatprep.subr.bf16.mxu0 %v146_v4  ;;  %v26_v13 = vld [vmem:[%s309_s1 + $0x58] sm:$0xff]  ;;  %v152_v14 = vpack.c.bf16 %v21_v11, %v19_v10  ;;  %v23_v16 = vld [vmem:[%s309_s1 + $0x40] sm:$0xff]  ;;  %v25_v17 = vld [vmem:[%s309_s1 + $0x50] sm:$0xff]  ;;  %v55_v52 = vsub.s32 1, %v50_v51  ;;  %v51_v59 = vsub.s32 0, %v50_v51 }
   0x5   :  { %149 = vmatpush1.bf16.msra.mxu0 %v148_v8  ;;  %v154_v15 = vpack.c.bf16 %v26_v13, %v24_v12  ;;  %v28_v18 = vld [vmem:[%s309_s1 + $0x68] sm:$0xff]  ;;  %v30_v19 = vld [vmem:[%s309_s1 + $0x78] sm:$0xff]  ;;  %v156_v20 = vpack.c.bf16 %v25_v17, %v23_v16  ;;  %v27_v22 = vld [vmem:[%s309_s1 + $0x60] sm:$0xff] }
   0x6   :  { %151 = vmatprep.subr.bf16.mxu0 %v150_v9  ;;  %v158_v21 = vpack.c.bf16 %v30_v19, %v28_v18  ;;  %v29_v23 = vld [vmem:[%s309_s1 + $0x70] sm:$0xff]  ;;  %v32_v24 = vld [vmem:[%s309_s1 + $0x88] sm:$0xff]  ;;  %v34_v25 = vld [vmem:[%s309_s1 + $0x98] sm:$0xff] }
   0x7   :  { %v160_v26 = vpack.c.bf16 %v29_v23, %v27_v22  ;;  %v162_v27 = vpack.c.bf16 %v34_v25, %v32_v24  ;;  %v31_v28 = vld [vmem:[%s309_s1 + $0x80] sm:$0xff]  ;;  %v33_v29 = vld [vmem:[%s309_s1 + $0x90] sm:$0xff]  ;;  %v36_v30 = vld [vmem:[%s309_s1 + $0xa8] sm:$0xff] }
   0x8   :  { %v38_v31 = vld [vmem:[%s309_s1 + $0xb8] sm:$0xff]  ;;  %v164_v32 = vpack.c.bf16 %v33_v29, %v31_v28  ;;  %v35_v34 = vld [vmem:[%s309_s1 + $0xa0] sm:$0xff]  ;;  %v37_v35 = vld [vmem:[%s309_s1 + $0xb0] sm:$0xff] }
   0x9   :  { %153 = vmatpush1.bf16.msra.mxu0 %v152_v14  ;;  %v166_v33 = vpack.c.bf16 %v38_v31, %v36_v30  ;;  %v40_v36 = vld [vmem:[%s309_s1 + $0xc8] sm:$0xff]  ;;  %v42_v37 = vld [vmem:[%s309_s1 + $0xd8] sm:$0xff]  ;;  %v168_v38 = vpack.c.bf16 %v37_v35, %v35_v34  ;;  %v39_v40 = vld [vmem:[%s309_s1 + $0xc0] sm:$0xff] }
   0xa   :  { %155 = vmatprep.subr.bf16.mxu0 %v154_v15  ;;  %v170_v39 = vpack.c.bf16 %v42_v37, %v40_v36  ;;  %v41_v41 = vld [vmem:[%s309_s1 + $0xd0] sm:$0xff]  ;;  %v44_v42 = vld [vmem:[%s309_s1 + $0xe8] sm:$0xff]  ;;  %v46_v43 = vld [vmem:[%s309_s1 + $0xf8] sm:$0xff] }
   0xb   :  { %v172_v44 = vpack.c.bf16 %v41_v41, %v39_v40  ;;  %v174_v45 = vpack.c.bf16 %v46_v43, %v44_v42  ;;  %v43_v46 = vld [vmem:[%s309_s1 + $0xe0] sm:$0xff]  ;;  %v45_v47 = vld [vmem:[%s309_s1 + $0xf0] sm:$0xff] }
   0xc   :  { %v176_v48 = vpack.c.bf16 %v45_v47, %v43_v46  ;;  %v14_v49 = vld [vmem:[%s310_s0] sm:$0xff] }
   0xd   :  { %157 = vmatpush1.bf16.msra.mxu0 %v156_v20  ;;  %v47_v53 = vld [vmem:[%s311_s2] sm:$0x3] }
   0xe   :  { %159 = vmatprep.subr.bf16.mxu0 %v158_v21  ;;  %v56_v54 = vrot.slane %v47_v53, %v55_v52  ;;  %v52_v61 = vrot.slane %v47_v53, %v51_v59 }
  0x11   :  { %161 = vmatpush1.bf16.msra.mxu0 %v160_v26 }
  0x12   :  { %163 = vmatprep.subr.bf16.mxu0 %v162_v27 }
  0x15   :  { %165 = vmatpush1.bf16.msra.mxu0 %v164_v32 }
  0x16   :  { %167 = vmatprep.subr.bf16.mxu0 %v166_v33 }
  0x19   :  { %169 = vmatpush1.bf16.msra.mxu0 %v168_v38 }
  0x1a   :  { %171 = vmatprep.subr.bf16.mxu0 %v170_v39 }
  0x1d   :  { %173 = vmatpush1.bf16.msra.mxu0 %v172_v44 }
  0x1e   :  { %175 = vmatprep.subr.bf16.mxu0 %v174_v45 }
  0x21   :  { %177 = vmatpush1.bf16.msra.mxu0 %v176_v48 }
  0x24   :  { %124 = vmatmul.mubr.f32.vlgmr.msra.gmra.mrb[0].mxu0 %v14_v49 }
  0xf7   :  { %v125_v55 = vpop.f32.mrb[0].mxu0 }
  0xf8   :  { %v127_v56 = vpop.f32.mrb[1].mxu0  ;;  %v126_v63 = vadd.f32 %v125_v55, %v52_v61 }
  0xf9   :  { %v128_v57 = vadd.f32 %v127_v56, %v56_v54 }
  0xfa   :  { %v130_v0 = vmax.f32 %v126_v63, 0.0 }
  0xfb   :  { %v145_v58 = vmul.f32 -1.442695, %v128_v57 }
  0xfc   :  { %v137_v1 = vsub.f32 %v130_v0, %v14_v49 }
  0xfd   :  { %179 = vpow2.f32 %v145_v58 }
 0x107   :  { %v180_v60 = vpop.eup %179 }
 0x108   :  { %v134_v62 = vadd.f32 1.0, %v180_v60 }
 0x10a   :  { %181 = vrcp.f32 %v134_v62 }
 0x114   :  { %v182_v2 = vpop.eup %181 }
 0x115   :  { %v138_v3 = vmul.f32 %v182_v2, %v137_v1 }
 0x117   :  { %v139_v4 = vadd.f32 %v138_v3, %v14_v49 }
 0x119   :  { %140 = vst [vmem:[%s312_s3] sm:$0xff] %v139_v4 }

</bundles_post_ra>
